<compile_context>
chip_gen: v5e
topology: v5e:2x2
jax: 0.10.0
libtpu: 0.0.40
codegen_flags: <defaults>
</compile_context>

<pallas_src>
import jax
import jax.numpy as jnp
from jax.experimental import pallas as pl
from jax.experimental.pallas import tpu as pltpu


# ---------------------------------------------------------------------------
# Weight construction (replicates Gaussian.__init__)
# ---------------------------------------------------------------------------
def make_gaussian_1d(sigmalist, kernel_size):
    """Normalized 1-D Gaussian windows, one per sigma: (S, K)."""
    mu = kernel_size // 2
    xs = jnp.arange(kernel_size, dtype=jnp.float32)
    rows = []
    for sigma in sigmalist:
        g = jnp.exp(-((xs - mu) ** 2) / float(2 * sigma ** 2))
        rows.append(g / jnp.sum(g))
    return jnp.stack(rows, axis=0)


def make_gaussian_weight(in_channels, sigmalist, kernel_size):
    """Full 2-D weights exactly as the module builds them: (C, S, K, K), w_s = outer(g_s, g_s)."""
    g = make_gaussian_1d(sigmalist, kernel_size)          # (S, K)
    w2d = jnp.einsum("si,sj->sij", g, g)                  # (S, K, K)
    return jnp.broadcast_to(w2d[None], (in_channels,) + w2d.shape)
    # TODO(synk): frozePara (requires_grad=False) has no Pallas equivalent; weights are constants.


# ---------------------------------------------------------------------------
# Fused separable grouped-conv kernel
# ---------------------------------------------------------------------------
def _fused_gaussian_kernel(bhT_ref, bv_ref, x_ref, o_ref):
    # bhT_ref: (S, W, OW)   horizontal band matrices (already transposed), VMEM-resident
    # bv_ref : (S, OH, H)   vertical band matrices, VMEM-resident
    # x_ref  : (NB, H, W)   slab of NB input images (one per (n, c) pair)
    # o_ref  : (NB, S, OH, OW)
    nb = x_ref.shape[0]
    n_sigma = bv_ref.shape[0]
    for n in range(nb):                       # static unroll; nb is small & VMEM-bounded
        xn = x_ref[n]                         # (H, W), loaded from VMEM once per image
        for s in range(n_sigma):              # static unroll over sigmas
            # horizontal 1-D blur: (H, W) @ (W, OW) -> (H, OW); never touches HBM
            t = jnp.dot(xn, bhT_ref[s], preferred_element_type=jnp.float32)
            # vertical 1-D blur: (OH, H) @ (H, OW) -> (OH, OW)
            o_ref[n, s] = jnp.dot(
                bv_ref[s], t, preferred_element_type=jnp.float32
            ).astype(o_ref.dtype)


_MAX_IMAGES_PER_STEP = 16      # bounds in-kernel unrolling / generated code size


def _images_per_step(G, H, W, S, OH, OW):
    """Images per grid step (always divides G) + explicit VMEM limit, from a per-core budget."""
    try:
        # 128 MiB on v5e/v6e, 64 MiB per TensorCore on v7x
        vmem_cap = pltpu.get_tpu_info().vmem_capacity_bytes
    except Exception:
        vmem_cap = 64 << 20                       # conservative fallback (v7x per-TC)
    vmem_limit = min(64 << 20, vmem_cap // 2)     # 64 MiB on v5e/v6e, 32 MiB/TC on v7x
    budget = (vmem_limit * 5) // 8                # headroom for compiler-internal scratch

    f32 = 4
    # Resident band matrices (constant block index -> fetched once, but the default
    # pipeline still reserves 2 buffers) plus a few live (H, OW) intermediates.
    # TODO(synk): pipeline_mode=pl.Buffered(1) on the band specs would drop their 2nd buffer.
    fixed = 2 * f32 * S * (W * OW + OH * H) + 4 * f32 * H * OW
    # Streamed, double-buffered blocks: input slab + output slab, per image.
    per_img = 2 * f32 * (H * W + S * OH * OW)
    nb_vmem = max(1, (budget - fixed) // per_img) if budget > fixed else 1
    # TODO(synk): for very large H/W the dense band matrices outgrow VMEM and waste MXU
    # FLOPs on zeros; that needs row-slab + OW/OH band tiling with halos (not implemented).

    # v7x megacore: keep >= 2 grid steps (prefer an even count) so both TensorCores work.
    nb = int(min(_MAX_IMAGES_PER_STEP, nb_vmem, max(1, (G + 1) // 2)))
    divs = [d for d in range(1, nb + 1) if G % d == 0]     # exact coverage, no edge block
    even = [d for d in divs if (G // d) % 2 == 0]
    return (max(even) if even else max(divs)), vmem_limit


def gaussian_forward(x, g1d, stride=1, padding=0):
    """Separable grouped Gaussian blur == Gaussian.forward.

    x: (N, C, H, W) float32; g1d: (S, K) normalized 1-D windows.
    Returns (N, C*S, OH, OW) float32, out-channel order co = c*S + s.
    """
    N, C, H, W = x.shape
    S, K = g1d.shape
    OH = (H + 2 * padding - K) // stride + 1
    OW = (W + 2 * padding - K) // stride + 1
    assert OH > 0 and OW > 0, "kernel larger than (padded) input"

    # Banded 1-D conv matrices with zero-padding absorbed (no jnp.pad of the input):
    #   BhT[s, w, ow] = g_s[w + padding - ow*stride]  if that index lies in [0, K)
    #   Bv [s, oh, h] = g_s[h + padding - oh*stride]  if that index lies in [0, K)
    dh = jnp.arange(W)[:, None] + padding - (jnp.arange(OW) * stride)[None, :]    # (W, OW)
    bhT = jnp.where((dh >= 0) & (dh < K), g1d[:, jnp.clip(dh, 0, K - 1)], 0.0)    # (S, W, OW)
    dv = jnp.arange(H)[None, :] + padding - (jnp.arange(OH) * stride)[:, None]    # (OH, H)
    bv = jnp.where((dv >= 0) & (dv < K), g1d[:, jnp.clip(dv, 0, K - 1)], 0.0)     # (S, OH, H)

    G = N * C
    x3 = x.reshape(G, H, W)                       # free reshape, no HBM copy

    nb, vmem_limit = _images_per_step(G, H, W, S, OH, OW)
    grid = (G // nb,)                             # nb divides G exactly

    out = pl.pallas_call(
        _fused_gaussian_kernel,
        out_shape=jax.ShapeDtypeStruct((G, S, OH, OW), x.dtype),
        grid_spec=pltpu.PrefetchScalarGridSpec(
            num_scalar_prefetch=0,
            grid=grid,
            in_specs=[
                # Band matrices: constant block index -> DMA'd once, resident across steps.
                pl.BlockSpec((S, W, OW), lambda i: (0, 0, 0)),
                pl.BlockSpec((S, OH, H), lambda i: (0, 0, 0)),
                # Streamed image slab.
                pl.BlockSpec((nb, H, W), lambda i: (i, 0, 0)),
            ],
            out_specs=pl.BlockSpec((nb, S, OH, OW), lambda i: (i, 0, 0, 0)),
        ),
        compiler_params=pltpu.CompilerParams(
            dimension_semantics=("parallel",),
            vmem_limit_bytes=int(vmem_limit)),
    )(bhT, bv, x3)

    # (N*C, S, OH, OW) -> (N, C*S, OH, OW): pure reshape, channel order co = c*S + s.
    return out.reshape(N, C * S, OH, OW)


# ---------------------------------------------------------------------------
# Demo + check against XLA grouped conv (same semantics as nn.Conv2d(groups=C))
# ---------------------------------------------------------------------------
if __name__ == "__main__":
    in_channels = 1                   # PyTorch reshape only type-checks for C=1 (dot maps)
    sigmalist = [1.0, 2.0, 4.0, 8.0]
    kernel_size = 8
    N, H, W = 2, 16, 16

    key = jax.random.PRNGKey(0)
    x = jax.random.normal(key, (N, in_channels, H, W), dtype=jnp.float32)

    g1d = make_gaussian_1d(sigmalist, kernel_size)                        # (S, K)
    S = len(sigmalist)
    weight = make_gaussian_weight(in_channels, sigmalist, kernel_size)    # (C, S, K, K)
    w_conv = weight.reshape(in_channels * S, 1, kernel_size, kernel_size)

    def reference(xv, stride, padding):
        return jax.lax.conv_general_dilated(
            xv, w_conv, window_strides=(stride, stride),
            padding=[(padding, padding), (padding, padding)],
            dimension_numbers=("NCHW", "OIHW", "NCHW"),
            feature_group_count=in_channels,
            precision=jax.lax.Precision.HIGHEST)

    # Exercise both the default config and a strided/padded config.
    for stride, padding in [(1, 0), (2, 3)]:
        y = jax.block_until_ready(gaussian_forward(x, g1d, stride=stride, padding=padding))
        y_ref = reference(x, stride, padding)
        assert y.shape == y_ref.shape, (y.shape, y_ref.shape)
        max_err = float(jnp.max(jnp.abs(y - y_ref)))
        assert jnp.allclose(y, y_ref, atol=1e-4, rtol=1e-3), (stride, padding, max_err)

    print("KERNEL_OK")
</pallas_src>

<mosaic_0001>
module attributes {stable_mosaic.version = 11 : i64} {
  func.func @_fused_gaussian_kernel(%arg0: i32, %arg1: memref<4x16x9xf32, #tpu.memory_space<vmem>>, %arg2: memref<4x9x16xf32, #tpu.memory_space<vmem>>, %arg3: memref<1x16x16xf32, #tpu.memory_space<vmem>>, %arg4: memref<1x4x9x9xf32, #tpu.memory_space<vmem>>) attributes {dimension_semantics = [#tpu.dimension_semantics<parallel>], iteration_bounds = array<i64: 2>, scalar_prefetch = 0 : i64, scratch_operands = 0 : i64, tpu.core_type = #tpu.core_type<tc>, window_params = [{pipeline_mode = #tpu.pipeline_mode<synchronous>, transform_indices = @transform_0, window_bounds = array<i64: 4, 16, 9>}, {pipeline_mode = #tpu.pipeline_mode<synchronous>, transform_indices = @transform_1, window_bounds = array<i64: 4, 9, 16>}, {transform_indices = @transform_2, window_bounds = array<i64: 1, 16, 16>}, {transform_indices = @transform_3, window_bounds = array<i64: 1, 4, 9, 9>}]} {
    %c0 = arith.constant 0 : index
    %c0_0 = arith.constant 0 : index
    %c0_1 = arith.constant 0 : index
    %0 = vector.load %arg3[%c0, %c0_0, %c0_1] : memref<1x16x16xf32, #tpu.memory_space<vmem>>, vector<1x16x16xf32>
    %1 = vector.shape_cast %0 : vector<1x16x16xf32> to vector<16x16xf32>
    %c0_2 = arith.constant 0 : index
    %c0_3 = arith.constant 0 : index
    %c0_4 = arith.constant 0 : index
    %2 = vector.load %arg1[%c0_2, %c0_3, %c0_4] : memref<4x16x9xf32, #tpu.memory_space<vmem>>, vector<1x16x9xf32>
    %3 = vector.shape_cast %2 : vector<1x16x9xf32> to vector<16x9xf32>
    %cst = arith.constant dense<0.000000e+00> : vector<16x9xf32>
    %4 = tpu.matmul %1, %3, %cst {dimension_numbers = #tpu.dot_dimension_numbers<[1], [0], [0], [1], [0, 0, 1, 1], [], []>} : vector<16x16xf32>, vector<16x9xf32>, vector<16x9xf32> -> vector<16x9xf32>
    %c0_5 = arith.constant 0 : index
    %c0_6 = arith.constant 0 : index
    %c0_7 = arith.constant 0 : index
    %5 = vector.load %arg2[%c0_5, %c0_6, %c0_7] : memref<4x9x16xf32, #tpu.memory_space<vmem>>, vector<1x9x16xf32>
    %6 = vector.shape_cast %5 : vector<1x9x16xf32> to vector<9x16xf32>
    %cst_8 = arith.constant dense<0.000000e+00> : vector<9x9xf32>
    %7 = tpu.matmul %6, %4, %cst_8 {dimension_numbers = #tpu.dot_dimension_numbers<[1], [0], [0], [1], [0, 0, 1, 1], [], []>} : vector<9x16xf32>, vector<16x9xf32>, vector<9x9xf32> -> vector<9x9xf32>
    %c0_9 = arith.constant 0 : index
    %c0_10 = arith.constant 0 : index
    %c0_11 = arith.constant 0 : index
    %c0_12 = arith.constant 0 : index
    %8 = vector.load %arg4[%c0_9, %c0_10, %c0_11, %c0_12] : memref<1x4x9x9xf32, #tpu.memory_space<vmem>>, vector<1x1x9x9xf32>
    %9 = vector.shape_cast %8 : vector<1x1x9x9xf32> to vector<9x9xf32>
    %10 = vector.shape_cast %7 : vector<9x9xf32> to vector<1x1x9x9xf32>
    tpu.vector_store %arg4[%c0_9, %c0_10, %c0_11, %c0_12], %10 {strides = array<i32>} : memref<1x4x9x9xf32, #tpu.memory_space<vmem>>, vector<1x1x9x9xf32>,
    %c1 = arith.constant 1 : index
    %c0_13 = arith.constant 0 : index
    %c0_14 = arith.constant 0 : index
    %11 = vector.load %arg1[%c1, %c0_13, %c0_14] : memref<4x16x9xf32, #tpu.memory_space<vmem>>, vector<1x16x9xf32>
    %12 = vector.shape_cast %11 : vector<1x16x9xf32> to vector<16x9xf32>
    %cst_15 = arith.constant dense<0.000000e+00> : vector<16x9xf32>
    %13 = tpu.matmul %1, %12, %cst_15 {dimension_numbers = #tpu.dot_dimension_numbers<[1], [0], [0], [1], [0, 0, 1, 1], [], []>} : vector<16x16xf32>, vector<16x9xf32>, vector<16x9xf32> -> vector<16x9xf32>
    %c1_16 = arith.constant 1 : index
    %c0_17 = arith.constant 0 : index
    %c0_18 = arith.constant 0 : index
    %14 = vector.load %arg2[%c1_16, %c0_17, %c0_18] : memref<4x9x16xf32, #tpu.memory_space<vmem>>, vector<1x9x16xf32>
    %15 = vector.shape_cast %14 : vector<1x9x16xf32> to vector<9x16xf32>
    %cst_19 = arith.constant dense<0.000000e+00> : vector<9x9xf32>
    %16 = tpu.matmul %15, %13, %cst_19 {dimension_numbers = #tpu.dot_dimension_numbers<[1], [0], [0], [1], [0, 0, 1, 1], [], []>} : vector<9x16xf32>, vector<16x9xf32>, vector<9x9xf32> -> vector<9x9xf32>
    %c0_20 = arith.constant 0 : index
    %c1_21 = arith.constant 1 : index
    %c0_22 = arith.constant 0 : index
    %c0_23 = arith.constant 0 : index
    %17 = vector.load %arg4[%c0_20, %c1_21, %c0_22, %c0_23] : memref<1x4x9x9xf32, #tpu.memory_space<vmem>>, vector<1x1x9x9xf32>
    %18 = vector.shape_cast %17 : vector<1x1x9x9xf32> to vector<9x9xf32>
    %19 = vector.shape_cast %16 : vector<9x9xf32> to vector<1x1x9x9xf32>
    tpu.vector_store %arg4[%c0_20, %c1_21, %c0_22, %c0_23], %19 {strides = array<i32>} : memref<1x4x9x9xf32, #tpu.memory_space<vmem>>, vector<1x1x9x9xf32>,
    %c2 = arith.constant 2 : index
    %c0_24 = arith.constant 0 : index
    %c0_25 = arith.constant 0 : index
    %20 = vector.load %arg1[%c2, %c0_24, %c0_25] : memref<4x16x9xf32, #tpu.memory_space<vmem>>, vector<1x16x9xf32>
    %21 = vector.shape_cast %20 : vector<1x16x9xf32> to vector<16x9xf32>
    %cst_26 = arith.constant dense<0.000000e+00> : vector<16x9xf32>
    %22 = tpu.matmul %1, %21, %cst_26 {dimension_numbers = #tpu.dot_dimension_numbers<[1], [0], [0], [1], [0, 0, 1, 1], [], []>} : vector<16x16xf32>, vector<16x9xf32>, vector<16x9xf32> -> vector<16x9xf32>
    %c2_27 = arith.constant 2 : index
    %c0_28 = arith.constant 0 : index
    %c0_29 = arith.constant 0 : index
    %23 = vector.load %arg2[%c2_27, %c0_28, %c0_29] : memref<4x9x16xf32, #tpu.memory_space<vmem>>, vector<1x9x16xf32>
    %24 = vector.shape_cast %23 : vector<1x9x16xf32> to vector<9x16xf32>
    %cst_30 = arith.constant dense<0.000000e+00> : vector<9x9xf32>
    %25 = tpu.matmul %24, %22, %cst_30 {dimension_numbers = #tpu.dot_dimension_numbers<[1], [0], [0], [1], [0, 0, 1, 1], [], []>} : vector<9x16xf32>, vector<16x9xf32>, vector<9x9xf32> -> vector<9x9xf32>
    %c0_31 = arith.constant 0 : index
    %c2_32 = arith.constant 2 : index
    %c0_33 = arith.constant 0 : index
    %c0_34 = arith.constant 0 : index
    %26 = vector.load %arg4[%c0_31, %c2_32, %c0_33, %c0_34] : memref<1x4x9x9xf32, #tpu.memory_space<vmem>>, vector<1x1x9x9xf32>
    %27 = vector.shape_cast %26 : vector<1x1x9x9xf32> to vector<9x9xf32>
    %28 = vector.shape_cast %25 : vector<9x9xf32> to vector<1x1x9x9xf32>
    tpu.vector_store %arg4[%c0_31, %c2_32, %c0_33, %c0_34], %28 {strides = array<i32>} : memref<1x4x9x9xf32, #tpu.memory_space<vmem>>, vector<1x1x9x9xf32>,
    %c3 = arith.constant 3 : index
    %c0_35 = arith.constant 0 : index
    %c0_36 = arith.constant 0 : index
    %29 = vector.load %arg1[%c3, %c0_35, %c0_36] : memref<4x16x9xf32, #tpu.memory_space<vmem>>, vector<1x16x9xf32>
    %30 = vector.shape_cast %29 : vector<1x16x9xf32> to vector<16x9xf32>
    %cst_37 = arith.constant dense<0.000000e+00> : vector<16x9xf32>
    %31 = tpu.matmul %1, %30, %cst_37 {dimension_numbers = #tpu.dot_dimension_numbers<[1], [0], [0], [1], [0, 0, 1, 1], [], []>} : vector<16x16xf32>, vector<16x9xf32>, vector<16x9xf32> -> vector<16x9xf32>
    %c3_38 = arith.constant 3 : index
    %c0_39 = arith.constant 0 : index
    %c0_40 = arith.constant 0 : index
    %32 = vector.load %arg2[%c3_38, %c0_39, %c0_40] : memref<4x9x16xf32, #tpu.memory_space<vmem>>, vector<1x9x16xf32>
    %33 = vector.shape_cast %32 : vector<1x9x16xf32> to vector<9x16xf32>
    %cst_41 = arith.constant dense<0.000000e+00> : vector<9x9xf32>
    %34 = tpu.matmul %33, %31, %cst_41 {dimension_numbers = #tpu.dot_dimension_numbers<[1], [0], [0], [1], [0, 0, 1, 1], [], []>} : vector<9x16xf32>, vector<16x9xf32>, vector<9x9xf32> -> vector<9x9xf32>
    %c0_42 = arith.constant 0 : index
    %c3_43 = arith.constant 3 : index
    %c0_44 = arith.constant 0 : index
    %c0_45 = arith.constant 0 : index
    %35 = vector.load %arg4[%c0_42, %c3_43, %c0_44, %c0_45] : memref<1x4x9x9xf32, #tpu.memory_space<vmem>>, vector<1x1x9x9xf32>
    %36 = vector.shape_cast %35 : vector<1x1x9x9xf32> to vector<9x9xf32>
    %37 = vector.shape_cast %34 : vector<9x9xf32> to vector<1x1x9x9xf32>
    tpu.vector_store %arg4[%c0_42, %c3_43, %c0_44, %c0_45], %37 {strides = array<i32>} : memref<1x4x9x9xf32, #tpu.memory_space<vmem>>, vector<1x1x9x9xf32>,
    return
  }
  func.func @transform_0(%arg0: i32) -> (i32, i32, i32) {
    %c0_i32 = arith.constant 0 : i32
    %c0_i32_0 = arith.constant 0 : i32
    %c0_i32_1 = arith.constant 0 : i32
    %c0_i32_2 = arith.constant 0 : i32
    return %c0_i32, %c0_i32_0, %c0_i32_1 : i32, i32, i32
  }
  func.func @transform_1(%arg0: i32) -> (i32, i32, i32) {
    %c0_i32 = arith.constant 0 : i32
    %c0_i32_0 = arith.constant 0 : i32
    %c0_i32_1 = arith.constant 0 : i32
    %c0_i32_2 = arith.constant 0 : i32
    return %c0_i32, %c0_i32_0, %c0_i32_1 : i32, i32, i32
  }
  func.func @transform_2(%arg0: i32) -> (i32, i32, i32) {
    %c0_i32 = arith.constant 0 : i32
    %c0_i32_0 = arith.constant 0 : i32
    %c0_i32_1 = arith.constant 0 : i32
    return %arg0, %c0_i32, %c0_i32_0 : i32, i32, i32
  }
  func.func @transform_3(%arg0: i32) -> (i32, i32, i32, i32) {
    %c0_i32 = arith.constant 0 : i32
    %c0_i32_0 = arith.constant 0 : i32
    %c0_i32_1 = arith.constant 0 : i32
    %c0_i32_2 = arith.constant 0 : i32
    return %arg0, %c0_i32, %c0_i32_0, %c0_i32_1 : i32, i32, i32, i32
  }
}

</mosaic_0001>

<bundles_post_ra>
// kernel: tpu_custom_call.1
= control target key start
LH: loop header
LB: loop body
LE: loop exit
PB: predicated region body
PF: predicated region fallthrough
CT: control target
= control target key end

     0   :  { %s561_s12 = smov 0   ;;  %s646_s0 = inlined_call_operand.vmem [shape: f32[4,16,9], index: 0, kind: input, shape index: {}]   ;;  %s647_s1 = inlined_call_operand.vmem [shape: f32[4,9,16], index: 1, kind: input, shape index: {}]   ;;  %s648_s2 = inlined_call_operand.vmem [shape: f32[2,16,16], index: 2, kind: input, shape index: {}]   ;;  %s649_s3 = inlined_call_operand.vmem [shape: f32[2,4,9,9], index: 3, kind: output, shape index: {}]  }
   0x1 LB: > { %s478_s13 = sadd.s32 4294967295, %s539_s12   ;;  %p482_p0 = scmp.ge.s32.totalorder %s539_s12, 1  ;;  %s539_s12 = sphi %s561_s12, %s13_s12  }
   0x2   : > { %p137_p1 = scmp.lt.s32.totalorder %s539_s12, 3 }
   0x4   : > { %p138_p2 = pnand %p482_p0, %p137_p1 }
   0x5   : > { %p161_p3 = scmp.lt.s32.totalorder (!%p138_p2), %s478_s13, 1 }
   0x6   : > { %141 = sbr.rel (%p138_p2) target bundleno = 315 (0x13b), region = 32 }
   0xb   : > { %v492_v0 = vld [vmem:[%s646_s0 + $0x18] sm:$0xff]  ;;  %v174_v1 = vld [vmem:[%s646_s0 + $0x8] sm:$0xff]  ;;  %v491_v2 = vld [vmem:[%s646_s0 + $0x10] sm:$0xff]  ;;  %s651_s13 = smov (!%p161_p3, %s478_s13), 1  ;;  %vm175_vm0 = vcmask 130048   ;;  %vm236_vm1 = vcmask 72704  }
   0xc   : > { %257 = vmatpush.msra.mxu2 %v492_v0  ;;  %196 = vmatpush.msra.mxu0 %v174_v1  ;;  %v173_v3 = vld [vmem:[%s646_s0] sm:$0xff]  ;;  %v512_v4 = vld [vmem:[%s646_s0 + $0x38] sm:$0xff]  ;;  %v502_v5 = vld [vmem:[%s646_s0 + $0x28] sm:$0xff]  ;;  %s523_s30 = sshll.u32 %s651_s13, 4  ;;  %s524_s25 = sshll.u32 %s651_s13, 6  ;;  %vm238_vm2 = vcmask 65536  }
   0xd   : > { %v511_v6 = vld [vmem:[%s646_s0 + $0x30] sm:$0xff]  ;;  %v501_v7 = vld [vmem:[%s646_s0 + $0x20] sm:$0xff]  ;;  %s165_s6 = scalar_lea.vmem %s648_s2, %s523_s30  ;;  %v206_v17 = vld [vmem:[%s647_s1 + $0x8] sm:$0x1]  ;;  %s170_s28 = scalar_lea.vmem %s649_s3, %s524_s25 }
   0xe   : > { %258 = vmatpush.msra.mxu2 %v491_v2  ;;  %197 = vmatpush.msra.mxu0 %v173_v3  ;;  %v171_v8 = vld [vmem:[%s165_s6] sm:$0xff]  ;;  %v172_v9 = vld [vmem:[%s165_s6 + $0x8] sm:$0xff]  ;;  %v495_v15 = vld [vmem:[%s647_s1 + $0x10] sm:$0xff] }
   0xf   : > { %493 = vmatmul.msk.f32.vlgmr.msra.gmra.mxu2 %vm175_vm0, %v171_v8  ;;  %487 = vmatmul.msk.f32.vlgmr.msra.gmra.mxu0 %vm175_vm0, %v171_v8  ;;  %v205_v13 = vld [vmem:[%s647_s1] sm:$0xff]  ;;  %v496_v19 = vld [vmem:[%s647_s1 + $0x18] sm:$0x1]  ;;  %v515_v23 = vld [vmem:[%s647_s1 + $0x30] sm:$0xff] }
  0x10   : > { %379 = vmatpush.msrb.mxu2 %v512_v4  ;;  %318 = vmatpush.msrb.mxu0 %v502_v5  ;;  %v505_v21 = vld [vmem:[%s647_s1 + $0x20] sm:$0xff]  ;;  %v506_v24 = vld [vmem:[%s647_s1 + $0x28] sm:$0x1]  ;;  %v516_v25 = vld [vmem:[%s647_s1 + $0x38] sm:$0x1] }
  0x12   : > { %380 = vmatpush.msrb.mxu2 %v511_v6  ;;  %319 = vmatpush.msrb.mxu0 %v501_v7 }
  0x17   : > { %494 = vmatmul.msk.f32.gmra.mxu2 %vm175_vm0, %v172_v9  ;;  %488 = vmatmul.msk.f32.gmra.mxu0 %vm175_vm0, %v172_v9 }
  0x1f   : > { %513 = vmatmul.msk.f32.vlgmr.msrb.gmra.mxu2 %vm175_vm0, %v171_v8  ;;  %503 = vmatmul.msk.f32.vlgmr.msrb.gmra.mxu0 %vm175_vm0, %v171_v8 }
  0x27   : > { %514 = vmatmul.msk.f32.gmra.mxu2 %vm175_vm0, %v172_v9  ;;  %504 = vmatmul.msk.f32.gmra.mxu0 %vm175_vm0, %v172_v9 }
  0x8c   : > { %v199_v10 = vpop.f32.mrf.mxu0 }
  0x92   : > { %v260_v11 = vpop.f32.mrf.mxu2 }
  0x94   : > { %v202_v12 = vpop.f32.mrf.mxu0 }
  0x95   : > { %227 = vmatpush.msra.mxu1 %v202_v12 }
  0x97   : > { %228 = vmatpush.msra.mxu1 %v199_v10 }
  0x98   : > { %489 = vmatmul.msk.f32.vlgmr.msra.gmra.mxu1 %vm175_vm0, %v205_v13 }
  0x9a   : > { %v263_v14 = vpop.f32.mrf.mxu2 }
  0x9b   : > { %289 = vmatpush.msra.mxu3 %v263_v14 }
  0x9c   : > { %v321_v16 = vpop.f32.mrf.mxu0 }
  0x9d   : > { %290 = vmatpush.msra.mxu3 %v260_v11 }
  0x9e   : > { %497 = vmatmul.msk.f32.vlgmr.msra.gmra.mxu3 %vm175_vm0, %v495_v15 }
  0xa0   : > { %490 = vmatmul.msk.f32.gmra.mxu1 %vm175_vm0, %v206_v17 }
  0xa2   : > { %v382_v18 = vpop.f32.mrf.mxu2 }
  0xa4   : > { %v324_v20 = vpop.f32.mrf.mxu0 }
  0xa5   : > { %350 = vmatpush.msrb.mxu1 %v324_v20 }
  0xa6   : > { %498 = vmatmul.msk.f32.gmra.mxu3 %vm175_vm0, %v496_v19 }
  0xa7   : > { %351 = vmatpush.msrb.mxu1 %v321_v16 }
  0xa8   : > { %507 = vmatmul.msk.f32.vlgmr.msrb.gmra.mxu1 %vm175_vm0, %v505_v21 }
  0xaa   : > { %v385_v22 = vpop.f32.mrf.mxu2 }
  0xab   : > { %411 = vmatpush.msrb.mxu3 %v385_v22 }
  0xad   : > { %412 = vmatpush.msrb.mxu3 %v382_v18 }
  0xae   : > { %517 = vmatmul.msk.f32.vlgmr.msrb.gmra.mxu3 %vm175_vm0, %v515_v23 }
  0xb0   : > { %508 = vmatmul.msk.f32.gmra.mxu1 %vm175_vm0, %v506_v24 }
  0xb6   : > { %518 = vmatmul.msk.f32.gmra.mxu3 %vm175_vm0, %v516_v25 }
 0x115   : > { %v230_v26 = vpop.f32.mrf.mxu1 }
 0x116   : > { %237 = vst.msk [vmem:[%s170_s28] sm:$0xff] %vm236_vm1, %v230_v26 }
 0x11d   : > { %v233_v27 = vpop.f32.mrf.mxu1 }
 0x11e   : > { %239 = vst.msk [vmem:[%s170_s28 + $0x8] sm:$0x1] %vm238_vm2, %v233_v27 }
 0x121   : > { %v292_v28 = vpop.f32.mrf.mxu3 }
 0x122   : > { %499 = vst.msk [vmem:[%s170_s28 + $0x10] sm:$0xff] %vm236_vm1, %v292_v28 }
 0x125   : > { %v353_v29 = vpop.f32.mrf.mxu1 }
 0x126   : > { %509 = vst.msk [vmem:[%s170_s28 + $0x20] sm:$0xff] %vm236_vm1, %v353_v29 }
 0x129   : > { %v295_v30 = vpop.f32.mrf.mxu3 }
 0x12a   : > { %500 = vst.msk [vmem:[%s170_s28 + $0x18] sm:$0x1] %vm238_vm2, %v295_v30 }
 0x12d   : > { %v356_v31 = vpop.f32.mrf.mxu1 }
 0x12e   : > { %510 = vst.msk [vmem:[%s170_s28 + $0x28] sm:$0x1] %vm238_vm2, %v356_v31 }
 0x131   : > { %v414_v32 = vpop.f32.mrf.mxu3 }
 0x132   : > { %519 = vst.msk [vmem:[%s170_s28 + $0x30] sm:$0xff] %vm236_vm1, %v414_v32 }
 0x139   : > { %v417_v33 = vpop.f32.mrf.mxu3 }
 0x13a   : > { %520 = vst.msk [vmem:[%s170_s28 + $0x38] sm:$0x1] %vm238_vm2, %v417_v33 }
 0x13b PF: > { %s13_s12 = sadd.s32 1, %s539_s12  }
 0x13c   : > { %p10_p4 = scmp.ge.s32.totalorder %s13_s12, 4  }
 0x13e   :  { %12 = sbr.rel (!%p10_p4) target bundleno = 1 (0x1), region = 71 }

</bundles_post_ra>
